<compile_context>
chip_gen: v7x
topology: tpu7x:2x2x1
jax: 0.10.0
libtpu: 0.0.40
codegen_flags: <defaults>
</compile_context>

<pallas_src>
import functools

import jax
import jax.numpy as jnp
from jax import lax
from jax.experimental import pallas as pl
from jax.experimental.pallas import tpu as pltpu


# ---------------------------------------------------------------------------
# Fused attention kernel factory (one grid step == one batch element)
# ---------------------------------------------------------------------------
def _make_fused_attention_kernel(num_heads, head_dim, v_head_dim,
                                 has_mask, self_attn, use_bf16):
    H, Dh, Dv = num_heads, head_dim, v_head_dim
    HDh, HDv = H * Dh, H * Dv
    scale = head_dim ** (-0.5)

    def kernel(*refs):
        refs = list(refs)
        x_ref = refs.pop(0)                          # (1, T, E)
        c_ref = None if self_attn else refs.pop(0)   # (1, S, C)
        mask_ref = refs.pop(0) if has_mask else None  # (1, T, S) bf16 0/1
        if self_attn:
            wqkv_ref, bqkv_ref, wz_ref, bz_ref, o_ref, z_scratch = refs
        else:
            wq_ref, bq_ref, wkv_ref, bkv_ref, wz_ref, bz_ref, o_ref, z_scratch = refs

        x = x_ref[0]                                 # (T, E)
        # MXU operand dtype (bf16 on request); accumulation is always f32.
        mm = jnp.bfloat16 if use_bf16 else x.dtype

        if self_attn:
            # Single fused projection: q|k|v = x @ [Wq|Wk|Wv] + b
            qkv = jnp.dot(x.astype(mm), wqkv_ref[...].astype(mm),
                          preferred_element_type=jnp.float32) + bqkv_ref[...]
            q_all = qkv[:, :HDh] * scale             # (T, H*Dh), scale folded in once
            k_all = qkv[:, HDh:2 * HDh]              # (S, H*Dh)   (S == T)
            v_all = qkv[:, 2 * HDh:]                 # (S, H*Dv)
        else:
            c = c_ref[0]                             # (S, C)
            q_all = (jnp.dot(x.astype(mm), wq_ref[...].astype(mm),
                             preferred_element_type=jnp.float32)
                     + bq_ref[...]) * scale          # (T, H*Dh)
            kv = jnp.dot(c.astype(mm), wkv_ref[...].astype(mm),
                         preferred_element_type=jnp.float32) + bkv_ref[...]
            k_all = kv[:, :HDh]                      # (S, H*Dh)
            v_all = kv[:, HDh:]                      # (S, H*Dv)

        if has_mask:
            # torch masked_fill semantics: score := -f32_max where ~mask.
            keep = mask_ref[0].astype(jnp.float32) > 0.0       # (T, S) bool, built once
            neg = jnp.float32(-jnp.finfo(jnp.float32).max)

        # Static per-head loop (lane slices only; no reshapes/transposes).
        for h in range(H):
            q_h = q_all[:, h * Dh:(h + 1) * Dh]      # (T, Dh)
            k_h = k_all[:, h * Dh:(h + 1) * Dh]      # (S, Dh)
            v_h = v_all[:, h * Dv:(h + 1) * Dv]      # (S, Dv)

            # scores = q . k^T  (contraction over the last dim, no explicit .T)
            s = lax.dot_general(q_h.astype(mm), k_h.astype(mm),
                                (((1,), (1,)), ((), ())),
                                preferred_element_type=jnp.float32)    # (T, S)
            if has_mask:
                s = jnp.where(keep, s, neg)

            # numerically-stable softmax over the key axis (f32 VPU/EUP math)
            s = s - jnp.max(s, axis=-1, keepdims=True)
            p = jnp.exp(s)
            p = p * pl.reciprocal(jnp.sum(p, axis=-1, keepdims=True), approx=True)

            z_scratch[:, h * Dv:(h + 1) * Dv] = jnp.dot(
                p.astype(mm), v_h.astype(mm), preferred_element_type=jnp.float32)

        # Single output projection over all heads: (T, H*Dv) @ (H*Dv, E) + bz
        out = jnp.dot(z_scratch[...].astype(mm), wz_ref[...].astype(mm),
                      preferred_element_type=jnp.float32) + bz_ref[...]
        o_ref[0] = out.astype(o_ref.dtype)

    return kernel


# ---------------------------------------------------------------------------
# Forward wrapper (whole module forward == one pallas_call)
# ---------------------------------------------------------------------------
def attention_forward(params, embed, context=None, mask=None, *,
                      num_heads, head_dim, v_head_dim, use_bf16=False):
    self_attn = context is None
    B, T, E = embed.shape
    if self_attn:
        S, C = T, E
    else:
        S, C = context.shape[1], context.shape[2]
    H, Dh, Dv = num_heads, head_dim, v_head_dim
    HDh, HDv = H * Dh, H * Dv

    bmap3 = lambda b: (b, 0, 0)
    wmap2 = lambda b: (0, 0)        # weights resident across the whole grid

    in_specs = [pl.BlockSpec((1, T, E), bmap3)]      # embed
    args = [embed]
    if not self_attn:
        in_specs.append(pl.BlockSpec((1, S, C), bmap3))   # context
        args.append(context)

    has_mask = mask is not None
    if has_mask:
        # Ship the boolean mask as bf16 0/1 (half the HBM bytes of int32).
        in_specs.append(pl.BlockSpec((1, T, S), bmap3))
        args.append(mask.astype(jnp.bfloat16))

    bq = params["bq"].reshape(1, HDh)
    bk = params["bk"].reshape(1, HDh)
    bv = params["bv"].reshape(1, HDv)
    wz = params["wz"]                                   # (HDv, E)
    bz = params["bz"].reshape(1, E)

    if self_attn:
        # Fused Q|K|V projection (in a real model, store the weights pre-fused).
        wqkv = jnp.concatenate([params["wq"], params["wk"], params["wv"]], axis=1)
        bqkv = jnp.concatenate([bq, bk, bv], axis=1)    # (1, 2*HDh + HDv)
        in_specs += [
            pl.BlockSpec((C, 2 * HDh + HDv), wmap2),    # wqkv
            pl.BlockSpec((1, 2 * HDh + HDv), wmap2),    # bqkv
            pl.BlockSpec((HDv, E), wmap2),              # wz
            pl.BlockSpec((1, E), wmap2),                # bz
        ]
        args += [wqkv, bqkv, wz, bz]
    else:
        # Fused K|V projection.
        wkv = jnp.concatenate([params["wk"], params["wv"]], axis=1)   # (C, HDh+HDv)
        bkv = jnp.concatenate([bk, bv], axis=1)                       # (1, HDh+HDv)
        in_specs += [
            pl.BlockSpec((E, HDh), wmap2),              # wq
            pl.BlockSpec((1, HDh), wmap2),              # bq
            pl.BlockSpec((C, HDh + HDv), wmap2),        # wkv
            pl.BlockSpec((1, HDh + HDv), wmap2),        # bkv
            pl.BlockSpec((HDv, E), wmap2),              # wz
            pl.BlockSpec((1, E), wmap2),                # bz
        ]
        args += [params["wq"], bq, wkv, bkv, wz, bz]

    kernel = _make_fused_attention_kernel(H, Dh, Dv, has_mask, self_attn, use_bf16)

    return pl.pallas_call(
        kernel,
        out_shape=jax.ShapeDtypeStruct((B, T, E), embed.dtype),
        grid_spec=pltpu.PrefetchScalarGridSpec(
            num_scalar_prefetch=0,
            grid=(B,),
            in_specs=in_specs,
            out_specs=pl.BlockSpec((1, T, E), bmap3),
            scratch_shapes=[pltpu.VMEM((T, HDv), jnp.float32)],   # per-head z staging
        ),
        compiler_params=pltpu.CompilerParams(
            dimension_semantics=("parallel",),
            vmem_limit_bytes=32 * 1024 * 1024,
        ),
    )(*args)


# ---------------------------------------------------------------------------
# Pure-JAX reference (mirrors the PyTorch module exactly) for validation
# ---------------------------------------------------------------------------
def attention_forward_ref(params, embed, context=None, mask=None, *,
                          num_heads, head_dim, v_head_dim):
    if context is None:
        context = embed
    B, T, E = embed.shape
    S = context.shape[1]
    H, Dh, Dv = num_heads, head_dim, v_head_dim

    flat_q = embed @ params["wq"] + params["bq"]
    flat_k = context @ params["wk"] + params["bk"]
    flat_v = context @ params["wv"] + params["bv"]

    q = flat_q.reshape(B, T, H, Dh)
    k = flat_k.reshape(B, S, H, Dh)
    v = flat_v.reshape(B, S, H, Dv)

    scale = Dh ** (-0.5)
    score = jnp.einsum("bthd,bThd->bhtT", q, k) * scale
    if mask is not None:
        max_neg = -jnp.finfo(score.dtype).max
        score = jnp.where(mask[:, None, :, :], score, max_neg)
    p = jax.nn.softmax(score, axis=-1)
    z = jnp.einsum("bhtT,bThd->bthd", p, v)
    flat_z = z.reshape(B, T, H * Dv)
    return flat_z @ params["wz"] + params["bz"]


# ---------------------------------------------------------------------------
def init_params(key, embed_dim, context_dim, head_dim, v_head_dim, num_heads):
    mh = head_dim * num_heads
    mvh = v_head_dim * num_heads
    ks = jax.random.split(key, 8)
    scale = 0.1
    return {
        "wq": scale * jax.random.normal(ks[0], (embed_dim, mh), jnp.float32),
        "bq": scale * jax.random.normal(ks[1], (mh,), jnp.float32),
        "wk": scale * jax.random.normal(ks[2], (context_dim, mh), jnp.float32),
        "bk": scale * jax.random.normal(ks[3], (mh,), jnp.float32),
        "wv": scale * jax.random.normal(ks[4], (context_dim, mvh), jnp.float32),
        "bv": scale * jax.random.normal(ks[5], (mvh,), jnp.float32),
        "wz": scale * jax.random.normal(ks[6], (mvh, embed_dim), jnp.float32),
        "bz": scale * jax.random.normal(ks[7], (embed_dim,), jnp.float32),
    }


if __name__ == "__main__":
    # Small, module-consistent shapes
    B, T, S = 2, 8, 8
    embed_dim, context_dim = 32, 16
    head_dim, v_head_dim, num_heads = 8, 8, 4

    key = jax.random.PRNGKey(0)
    kp_cross, kp_self, ke, kc, km = jax.random.split(key, 5)

    # Cross-attention module (context_dim != embed_dim).
    params_cross = init_params(kp_cross, embed_dim, context_dim,
                               head_dim, v_head_dim, num_heads)
    # Self-attention module (context_dim defaults to embed_dim, as in nn.Module).
    params_self = init_params(kp_self, embed_dim, embed_dim,
                              head_dim, v_head_dim, num_heads)

    embed = jax.random.normal(ke, (B, T, embed_dim), jnp.float32)
    context = jax.random.normal(kc, (B, S, context_dim), jnp.float32)
    mask = jax.random.bernoulli(km, 0.8, (B, T, S))

    fwd = functools.partial(attention_forward, num_heads=num_heads,
                            head_dim=head_dim, v_head_dim=v_head_dim)
    ref = functools.partial(attention_forward_ref, num_heads=num_heads,
                            head_dim=head_dim, v_head_dim=v_head_dim)

    # 1) cross-attention with mask (f32 MXU operands)
    out = jax.block_until_ready(fwd(params_cross, embed, context, mask))
    exp = ref(params_cross, embed, context, mask)
    assert out.shape == (B, T, embed_dim)
    assert jnp.allclose(out, exp, atol=2e-3, rtol=2e-3), \
        float(jnp.max(jnp.abs(out - exp)))

    # 2) self-attention, no mask (fused q|k|v projection, mask-free kernel)
    out_self = jax.block_until_ready(fwd(params_self, embed, None, None))
    exp_self = ref(params_self, embed, None, None)
    assert jnp.allclose(out_self, exp_self, atol=2e-3, rtol=2e-3), \
        float(jnp.max(jnp.abs(out_self - exp_self)))

    # 3) self-attention with mask (fused q|k|v projection + masked softmax)
    out_self_m = jax.block_until_ready(fwd(params_self, embed, None, mask))
    exp_self_m = ref(params_self, embed, None, mask)
    assert jnp.allclose(out_self_m, exp_self_m, atol=2e-3, rtol=2e-3), \
        float(jnp.max(jnp.abs(out_self_m - exp_self_m)))

    # 4) bf16 MXU-operand fast path (v6e/v7x), f32 accumulate + f32 softmax
    out_bf16 = jax.block_until_ready(
        fwd(params_cross, embed, context, mask, use_bf16=True))
    assert jnp.allclose(out_bf16, exp, atol=5e-2, rtol=5e-2), \
        float(jnp.max(jnp.abs(out_bf16 - exp)))

    print("KERNEL_OK")
</pallas_src>

<mosaic_0001>
module attributes {stable_mosaic.version = 11 : i64} {
  func.func @kernel(%arg0: i32, %arg1: memref<1x8x32xf32, #tpu.memory_space<vmem>>, %arg2: memref<1x8x16xf32, #tpu.memory_space<vmem>>, %arg3: memref<1x8x8xbf16, #tpu.memory_space<vmem>>, %arg4: memref<32x32xf32, #tpu.memory_space<vmem>>, %arg5: memref<1x32xf32, #tpu.memory_space<vmem>>, %arg6: memref<16x64xf32, #tpu.memory_space<vmem>>, %arg7: memref<1x64xf32, #tpu.memory_space<vmem>>, %arg8: memref<32x32xf32, #tpu.memory_space<vmem>>, %arg9: memref<1x32xf32, #tpu.memory_space<vmem>>, %arg10: memref<1x8x32xf32, #tpu.memory_space<vmem>>, %arg11: memref<8x32xf32, #tpu.memory_space<vmem>>) attributes {dimension_semantics = [#tpu.dimension_semantics<parallel>], iteration_bounds = array<i64: 2>, scalar_prefetch = 0 : i64, scratch_operands = 1 : i64, tpu.core_type = #tpu.core_type<tc>, window_params = [{transform_indices = @transform_0, window_bounds = array<i64: 1, 8, 32>}, {transform_indices = @transform_1, window_bounds = array<i64: 1, 8, 16>}, {transform_indices = @transform_2, window_bounds = array<i64: 1, 8, 8>}, {pipeline_mode = #tpu.pipeline_mode<synchronous>, transform_indices = @transform_3, window_bounds = array<i64: 32, 32>}, {pipeline_mode = #tpu.pipeline_mode<synchronous>, transform_indices = @transform_4, window_bounds = array<i64: 1, 32>}, {pipeline_mode = #tpu.pipeline_mode<synchronous>, transform_indices = @transform_5, window_bounds = array<i64: 16, 64>}, {pipeline_mode = #tpu.pipeline_mode<synchronous>, transform_indices = @transform_6, window_bounds = array<i64: 1, 64>}, {pipeline_mode = #tpu.pipeline_mode<synchronous>, transform_indices = @transform_7, window_bounds = array<i64: 32, 32>}, {pipeline_mode = #tpu.pipeline_mode<synchronous>, transform_indices = @transform_8, window_bounds = array<i64: 1, 32>}, {transform_indices = @transform_9, window_bounds = array<i64: 1, 8, 32>}]} {
    %c0 = arith.constant 0 : index
    %c0_0 = arith.constant 0 : index
    %c0_1 = arith.constant 0 : index
    %0 = vector.load %arg1[%c0, %c0_0, %c0_1] : memref<1x8x32xf32, #tpu.memory_space<vmem>>, vector<1x8x32xf32>
    %1 = vector.shape_cast %0 : vector<1x8x32xf32> to vector<8x32xf32>
    %c0_2 = arith.constant 0 : index
    %c0_3 = arith.constant 0 : index
    %c0_4 = arith.constant 0 : index
    %2 = vector.load %arg2[%c0_2, %c0_3, %c0_4] : memref<1x8x16xf32, #tpu.memory_space<vmem>>, vector<1x8x16xf32>
    %3 = vector.shape_cast %2 : vector<1x8x16xf32> to vector<8x16xf32>
    %c0_5 = arith.constant 0 : index
    %c0_6 = arith.constant 0 : index
    %4 = vector.load %arg4[%c0_5, %c0_6] : memref<32x32xf32, #tpu.memory_space<vmem>>, vector<32x32xf32>
    %cst = arith.constant dense<0.000000e+00> : vector<8x32xf32>
    %5 = tpu.matmul %1, %4, %cst {dimension_numbers = #tpu.dot_dimension_numbers<[1], [0], [0], [1], [0, 0, 1, 1], [], []>} : vector<8x32xf32>, vector<32x32xf32>, vector<8x32xf32> -> vector<8x32xf32>
    %c0_7 = arith.constant 0 : index
    %c0_8 = arith.constant 0 : index
    %6 = vector.load %arg5[%c0_7, %c0_8] : memref<1x32xf32, #tpu.memory_space<vmem>>, vector<1x32xf32>
    %7 = vector.broadcast %6 : vector<1x32xf32> to vector<8x32xf32>
    %8 = arith.addf %5, %7 : vector<8x32xf32>
    %cst_9 = arith.constant 0.353553385 : f32
    %9 = vector.broadcast %cst_9 : f32 to vector<8x32xf32>
    %10 = arith.mulf %8, %9 : vector<8x32xf32>
    %c0_10 = arith.constant 0 : index
    %c0_11 = arith.constant 0 : index
    %11 = vector.load %arg6[%c0_10, %c0_11] : memref<16x64xf32, #tpu.memory_space<vmem>>, vector<16x64xf32>
    %cst_12 = arith.constant dense<0.000000e+00> : vector<8x64xf32>
    %12 = tpu.matmul %3, %11, %cst_12 {dimension_numbers = #tpu.dot_dimension_numbers<[1], [0], [0], [1], [0, 0, 1, 1], [], []>} : vector<8x16xf32>, vector<16x64xf32>, vector<8x64xf32> -> vector<8x64xf32>
    %c0_13 = arith.constant 0 : index
    %c0_14 = arith.constant 0 : index
    %13 = vector.load %arg7[%c0_13, %c0_14] : memref<1x64xf32, #tpu.memory_space<vmem>>, vector<1x64xf32>
    %14 = vector.broadcast %13 : vector<1x64xf32> to vector<8x64xf32>
    %15 = arith.addf %12, %14 : vector<8x64xf32>
    %16 = vector.extract_strided_slice %15 {offsets = [0, 0], sizes = [8, 32], strides = [1, 1]} : vector<8x64xf32> to vector<8x32xf32>
    %17 = vector.extract_strided_slice %15 {offsets = [0, 32], sizes = [8, 32], strides = [1, 1]} : vector<8x64xf32> to vector<8x32xf32>
    %c0_15 = arith.constant 0 : index
    %c0_16 = arith.constant 0 : index
    %c0_17 = arith.constant 0 : index
    %18 = vector.load %arg3[%c0_15, %c0_16, %c0_17] : memref<1x8x8xbf16, #tpu.memory_space<vmem>>, vector<1x8x8xbf16>
    %19 = vector.shape_cast %18 : vector<1x8x8xbf16> to vector<8x8xbf16>
    %20 = arith.extf %19 : vector<8x8xbf16> to vector<8x8xf32>
    %cst_18 = arith.constant 0.000000e+00 : f32
    %21 = vector.broadcast %cst_18 : f32 to vector<8x8xf32>
    %22 = arith.cmpf ogt, %20, %21 : vector<8x8xf32>
    %23 = vector.extract_strided_slice %10 {offsets = [0, 0], sizes = [8, 8], strides = [1, 1]} : vector<8x32xf32> to vector<8x8xf32>
    %24 = vector.extract_strided_slice %16 {offsets = [0, 0], sizes = [8, 8], strides = [1, 1]} : vector<8x32xf32> to vector<8x8xf32>
    %25 = vector.extract_strided_slice %17 {offsets = [0, 0], sizes = [8, 8], strides = [1, 1]} : vector<8x32xf32> to vector<8x8xf32>
    %cst_19 = arith.constant dense<0.000000e+00> : vector<8x8xf32>
    %26 = tpu.matmul %23, %24, %cst_19 {dimension_numbers = #tpu.dot_dimension_numbers<[1], [1], [0], [0], [0, 0, 1, 0], [], []>} : vector<8x8xf32>, vector<8x8xf32>, vector<8x8xf32> -> vector<8x8xf32>
    %cst_20 = arith.constant -3.40282347E+38 : f32
    %27 = vector.broadcast %cst_20 : f32 to vector<8x8xf32>
    %28 = arith.select %22, %26, %27 : vector<8x8xi1>, vector<8x8xf32>
    %cst_21 = arith.constant dense<0xFF800000> : vector<8xf32>
    %29 = vector.multi_reduction <maximumf>, %28, %cst_21 [1] : vector<8x8xf32> to vector<8xf32>
    %30 = vector.shape_cast %29 : vector<8xf32> to vector<8x1xf32>
    %31 = vector.broadcast %30 : vector<8x1xf32> to vector<8x8xf32>
    %32 = arith.subf %28, %31 : vector<8x8xf32>
    %33 = math.exp %32 : vector<8x8xf32>
    %cst_22 = arith.constant dense<0.000000e+00> : vector<8xf32>
    %34 = vector.multi_reduction <add>, %33, %cst_22 [1] : vector<8x8xf32> to vector<8xf32>
    %35 = vector.shape_cast %34 : vector<8xf32> to vector<8x1xf32>
    %36 = tpu.reciprocal %35 {approx = true} : vector<8x1xf32> -> vector<8x1xf32>
    %37 = vector.broadcast %36 : vector<8x1xf32> to vector<8x8xf32>
    %38 = arith.mulf %33, %37 : vector<8x8xf32>
    %cst_23 = arith.constant dense<0.000000e+00> : vector<8x8xf32>
    %39 = tpu.matmul %38, %25, %cst_23 {dimension_numbers = #tpu.dot_dimension_numbers<[1], [0], [0], [1], [0, 0, 1, 1], [], []>} : vector<8x8xf32>, vector<8x8xf32>, vector<8x8xf32> -> vector<8x8xf32>
    %c0_24 = arith.constant 0 : index
    %c0_25 = arith.constant 0 : index
    %40 = vector.load %arg11[%c0_24, %c0_25] : memref<8x32xf32, #tpu.memory_space<vmem>>, vector<8x8xf32>
    tpu.vector_store %arg11[%c0_24, %c0_25], %39 {strides = array<i32>} : memref<8x32xf32, #tpu.memory_space<vmem>>, vector<8x8xf32>,
    %41 = vector.extract_strided_slice %10 {offsets = [0, 8], sizes = [8, 8], strides = [1, 1]} : vector<8x32xf32> to vector<8x8xf32>
    %42 = vector.extract_strided_slice %16 {offsets = [0, 8], sizes = [8, 8], strides = [1, 1]} : vector<8x32xf32> to vector<8x8xf32>
    %43 = vector.extract_strided_slice %17 {offsets = [0, 8], sizes = [8, 8], strides = [1, 1]} : vector<8x32xf32> to vector<8x8xf32>
    %cst_26 = arith.constant dense<0.000000e+00> : vector<8x8xf32>
    %44 = tpu.matmul %41, %42, %cst_26 {dimension_numbers = #tpu.dot_dimension_numbers<[1], [1], [0], [0], [0, 0, 1, 0], [], []>} : vector<8x8xf32>, vector<8x8xf32>, vector<8x8xf32> -> vector<8x8xf32>
    %cst_27 = arith.constant -3.40282347E+38 : f32
    %45 = vector.broadcast %cst_27 : f32 to vector<8x8xf32>
    %46 = arith.select %22, %44, %45 : vector<8x8xi1>, vector<8x8xf32>
    %cst_28 = arith.constant dense<0xFF800000> : vector<8xf32>
    %47 = vector.multi_reduction <maximumf>, %46, %cst_28 [1] : vector<8x8xf32> to vector<8xf32>
    %48 = vector.shape_cast %47 : vector<8xf32> to vector<8x1xf32>
    %49 = vector.broadcast %48 : vector<8x1xf32> to vector<8x8xf32>
    %50 = arith.subf %46, %49 : vector<8x8xf32>
    %51 = math.exp %50 : vector<8x8xf32>
    %cst_29 = arith.constant dense<0.000000e+00> : vector<8xf32>
    %52 = vector.multi_reduction <add>, %51, %cst_29 [1] : vector<8x8xf32> to vector<8xf32>
    %53 = vector.shape_cast %52 : vector<8xf32> to vector<8x1xf32>
    %54 = tpu.reciprocal %53 {approx = true} : vector<8x1xf32> -> vector<8x1xf32>
    %55 = vector.broadcast %54 : vector<8x1xf32> to vector<8x8xf32>
    %56 = arith.mulf %51, %55 : vector<8x8xf32>
    %cst_30 = arith.constant dense<0.000000e+00> : vector<8x8xf32>
    %57 = tpu.matmul %56, %43, %cst_30 {dimension_numbers = #tpu.dot_dimension_numbers<[1], [0], [0], [1], [0, 0, 1, 1], [], []>} : vector<8x8xf32>, vector<8x8xf32>, vector<8x8xf32> -> vector<8x8xf32>
    %c0_31 = arith.constant 0 : index
    %c8 = arith.constant 8 : index
    %58 = vector.load %arg11[%c0_31, %c8] : memref<8x32xf32, #tpu.memory_space<vmem>>, vector<8x8xf32>
    tpu.vector_store %arg11[%c0_31, %c8], %57 {strides = array<i32>} : memref<8x32xf32, #tpu.memory_space<vmem>>, vector<8x8xf32>,
    %59 = vector.extract_strided_slice %10 {offsets = [0, 16], sizes = [8, 8], strides = [1, 1]} : vector<8x32xf32> to vector<8x8xf32>
    %60 = vector.extract_strided_slice %16 {offsets = [0, 16], sizes = [8, 8], strides = [1, 1]} : vector<8x32xf32> to vector<8x8xf32>
    %61 = vector.extract_strided_slice %17 {offsets = [0, 16], sizes = [8, 8], strides = [1, 1]} : vector<8x32xf32> to vector<8x8xf32>
    %cst_32 = arith.constant dense<0.000000e+00> : vector<8x8xf32>
    %62 = tpu.matmul %59, %60, %cst_32 {dimension_numbers = #tpu.dot_dimension_numbers<[1], [1], [0], [0], [0, 0, 1, 0], [], []>} : vector<8x8xf32>, vector<8x8xf32>, vector<8x8xf32> -> vector<8x8xf32>
    %cst_33 = arith.constant -3.40282347E+38 : f32
    %63 = vector.broadcast %cst_33 : f32 to vector<8x8xf32>
    %64 = arith.select %22, %62, %63 : vector<8x8xi1>, vector<8x8xf32>
    %cst_34 = arith.constant dense<0xFF800000> : vector<8xf32>
    %65 = vector.multi_reduction <maximumf>, %64, %cst_34 [1] : vector<8x8xf32> to vector<8xf32>
    %66 = vector.shape_cast %65 : vector<8xf32> to vector<8x1xf32>
    %67 = vector.broadcast %66 : vector<8x1xf32> to vector<8x8xf32>
    %68 = arith.subf %64, %67 : vector<8x8xf32>
    %69 = math.exp %68 : vector<8x8xf32>
    %cst_35 = arith.constant dense<0.000000e+00> : vector<8xf32>
    %70 = vector.multi_reduction <add>, %69, %cst_35 [1] : vector<8x8xf32> to vector<8xf32>
    %71 = vector.shape_cast %70 : vector<8xf32> to vector<8x1xf32>
    %72 = tpu.reciprocal %71 {approx = true} : vector<8x1xf32> -> vector<8x1xf32>
    %73 = vector.broadcast %72 : vector<8x1xf32> to vector<8x8xf32>
    %74 = arith.mulf %69, %73 : vector<8x8xf32>
    %cst_36 = arith.constant dense<0.000000e+00> : vector<8x8xf32>
    %75 = tpu.matmul %74, %61, %cst_36 {dimension_numbers = #tpu.dot_dimension_numbers<[1], [0], [0], [1], [0, 0, 1, 1], [], []>} : vector<8x8xf32>, vector<8x8xf32>, vector<8x8xf32> -> vector<8x8xf32>
    %c0_37 = arith.constant 0 : index
    %c16 = arith.constant 16 : index
    %76 = vector.load %arg11[%c0_37, %c16] : memref<8x32xf32, #tpu.memory_space<vmem>>, vector<8x8xf32>
    tpu.vector_store %arg11[%c0_37, %c16], %75 {strides = array<i32>} : memref<8x32xf32, #tpu.memory_space<vmem>>, vector<8x8xf32>,
    %77 = vector.extract_strided_slice %10 {offsets = [0, 24], sizes = [8, 8], strides = [1, 1]} : vector<8x32xf32> to vector<8x8xf32>
    %78 = vector.extract_strided_slice %16 {offsets = [0, 24], sizes = [8, 8], strides = [1, 1]} : vector<8x32xf32> to vector<8x8xf32>
    %79 = vector.extract_strided_slice %17 {offsets = [0, 24], sizes = [8, 8], strides = [1, 1]} : vector<8x32xf32> to vector<8x8xf32>
    %cst_38 = arith.constant dense<0.000000e+00> : vector<8x8xf32>
    %80 = tpu.matmul %77, %78, %cst_38 {dimension_numbers = #tpu.dot_dimension_numbers<[1], [1], [0], [0], [0, 0, 1, 0], [], []>} : vector<8x8xf32>, vector<8x8xf32>, vector<8x8xf32> -> vector<8x8xf32>
    %cst_39 = arith.constant -3.40282347E+38 : f32
    %81 = vector.broadcast %cst_39 : f32 to vector<8x8xf32>
    %82 = arith.select %22, %80, %81 : vector<8x8xi1>, vector<8x8xf32>
    %cst_40 = arith.constant dense<0xFF800000> : vector<8xf32>
    %83 = vector.multi_reduction <maximumf>, %82, %cst_40 [1] : vector<8x8xf32> to vector<8xf32>
    %84 = vector.shape_cast %83 : vector<8xf32> to vector<8x1xf32>
    %85 = vector.broadcast %84 : vector<8x1xf32> to vector<8x8xf32>
    %86 = arith.subf %82, %85 : vector<8x8xf32>
    %87 = math.exp %86 : vector<8x8xf32>
    %cst_41 = arith.constant dense<0.000000e+00> : vector<8xf32>
    %88 = vector.multi_reduction <add>, %87, %cst_41 [1] : vector<8x8xf32> to vector<8xf32>
    %89 = vector.shape_cast %88 : vector<8xf32> to vector<8x1xf32>
    %90 = tpu.reciprocal %89 {approx = true} : vector<8x1xf32> -> vector<8x1xf32>
    %91 = vector.broadcast %90 : vector<8x1xf32> to vector<8x8xf32>
    %92 = arith.mulf %87, %91 : vector<8x8xf32>
    %cst_42 = arith.constant dense<0.000000e+00> : vector<8x8xf32>
    %93 = tpu.matmul %92, %79, %cst_42 {dimension_numbers = #tpu.dot_dimension_numbers<[1], [0], [0], [1], [0, 0, 1, 1], [], []>} : vector<8x8xf32>, vector<8x8xf32>, vector<8x8xf32> -> vector<8x8xf32>
    %c0_43 = arith.constant 0 : index
    %c24 = arith.constant 24 : index
    %94 = vector.load %arg11[%c0_43, %c24] : memref<8x32xf32, #tpu.memory_space<vmem>>, vector<8x8xf32>
    tpu.vector_store %arg11[%c0_43, %c24], %93 {strides = array<i32>} : memref<8x32xf32, #tpu.memory_space<vmem>>, vector<8x8xf32>,
    %c0_44 = arith.constant 0 : index
    %c0_45 = arith.constant 0 : index
    %95 = vector.load %arg11[%c0_44, %c0_45] : memref<8x32xf32, #tpu.memory_space<vmem>>, vector<8x32xf32>
    %c0_46 = arith.constant 0 : index
    %c0_47 = arith.constant 0 : index
    %96 = vector.load %arg8[%c0_46, %c0_47] : memref<32x32xf32, #tpu.memory_space<vmem>>, vector<32x32xf32>
    %cst_48 = arith.constant dense<0.000000e+00> : vector<8x32xf32>
    %97 = tpu.matmul %95, %96, %cst_48 {dimension_numbers = #tpu.dot_dimension_numbers<[1], [0], [0], [1], [0, 0, 1, 1], [], []>} : vector<8x32xf32>, vector<32x32xf32>, vector<8x32xf32> -> vector<8x32xf32>
    %c0_49 = arith.constant 0 : index
    %c0_50 = arith.constant 0 : index
    %98 = vector.load %arg9[%c0_49, %c0_50] : memref<1x32xf32, #tpu.memory_space<vmem>>, vector<1x32xf32>
    %99 = vector.broadcast %98 : vector<1x32xf32> to vector<8x32xf32>
    %100 = arith.addf %97, %99 : vector<8x32xf32>
    %c0_51 = arith.constant 0 : index
    %c0_52 = arith.constant 0 : index
    %c0_53 = arith.constant 0 : index
    %101 = vector.load %arg10[%c0_51, %c0_52, %c0_53] : memref<1x8x32xf32, #tpu.memory_space<vmem>>, vector<1x8x32xf32>
    %102 = vector.shape_cast %101 : vector<1x8x32xf32> to vector<8x32xf32>
    %103 = vector.shape_cast %100 : vector<8x32xf32> to vector<1x8x32xf32>
    tpu.vector_store %arg10[%c0_51, %c0_52, %c0_53], %103 {strides = array<i32>} : memref<1x8x32xf32, #tpu.memory_space<vmem>>, vector<1x8x32xf32>,
    return
  }
  func.func @transform_0(%arg0: i32) -> (i32, i32, i32) {
    %c0_i32 = arith.constant 0 : i32
    %c0_i32_0 = arith.constant 0 : i32
    %c0_i32_1 = arith.constant 0 : i32
    return %arg0, %c0_i32, %c0_i32_0 : i32, i32, i32
  }
  func.func @transform_1(%arg0: i32) -> (i32, i32, i32) {
    %c0_i32 = arith.constant 0 : i32
    %c0_i32_0 = arith.constant 0 : i32
    %c0_i32_1 = arith.constant 0 : i32
    return %arg0, %c0_i32, %c0_i32_0 : i32, i32, i32
  }
  func.func @transform_2(%arg0: i32) -> (i32, i32, i32) {
    %c0_i32 = arith.constant 0 : i32
    %c0_i32_0 = arith.constant 0 : i32
    %c0_i32_1 = arith.constant 0 : i32
    return %arg0, %c0_i32, %c0_i32_0 : i32, i32, i32
  }
  func.func @transform_3(%arg0: i32) -> (i32, i32) {
    %c0_i32 = arith.constant 0 : i32
    %c0_i32_0 = arith.constant 0 : i32
    %c0_i32_1 = arith.constant 0 : i32
    return %c0_i32, %c0_i32_0 : i32, i32
  }
  func.func @transform_4(%arg0: i32) -> (i32, i32) {
    %c0_i32 = arith.constant 0 : i32
    %c0_i32_0 = arith.constant 0 : i32
    %c0_i32_1 = arith.constant 0 : i32
    return %c0_i32, %c0_i32_0 : i32, i32
  }
  func.func @transform_5(%arg0: i32) -> (i32, i32) {
    %c0_i32 = arith.constant 0 : i32
    %c0_i32_0 = arith.constant 0 : i32
    %c0_i32_1 = arith.constant 0 : i32
    return %c0_i32, %c0_i32_0 : i32, i32
  }
  func.func @transform_6(%arg0: i32) -> (i32, i32) {
    %c0_i32 = arith.constant 0 : i32
    %c0_i32_0 = arith.constant 0 : i32
    %c0_i32_1 = arith.constant 0 : i32
    return %c0_i32, %c0_i32_0 : i32, i32
  }
  func.func @transform_7(%arg0: i32) -> (i32, i32) {
    %c0_i32 = arith.constant 0 : i32
    %c0_i32_0 = arith.constant 0 : i32
    %c0_i32_1 = arith.constant 0 : i32
    return %c0_i32, %c0_i32_0 : i32, i32
  }
  func.func @transform_8(%arg0: i32) -> (i32, i32) {
    %c0_i32 = arith.constant 0 : i32
    %c0_i32_0 = arith.constant 0 : i32
    %c0_i32_1 = arith.constant 0 : i32
    return %c0_i32, %c0_i32_0 : i32, i32
  }
  func.func @transform_9(%arg0: i32) -> (i32, i32, i32) {
    %c0_i32 = arith.constant 0 : i32
    %c0_i32_0 = arith.constant 0 : i32
    %c0_i32_1 = arith.constant 0 : i32
    return %arg0, %c0_i32, %c0_i32_0 : i32, i32, i32
  }
}

</mosaic_0001>

<bundles_post_ra>
// kernel: tpu_custom_call.1
= control target key start
LH: loop header
LB: loop body
LE: loop exit
PB: predicated region body
PF: predicated region fallthrough
CT: control target
= control target key end

     0   :  { %s2503_s0 = inlined_call_operand.hbm [shape: f32[2,8,32], index: 0, kind: input, shape index: {}]   ;;  %s2504_s1 = inlined_call_operand.hbm [shape: f32[2,8,16], index: 1, kind: input, shape index: {}]   ;;  %s2505_s2 = inlined_call_operand.hbm [shape: bf16[2,8,8], index: 2, kind: input, shape index: {}]   ;;  %s2506_s3 = inlined_call_operand.hbm [shape: f32[32,32], index: 3, kind: input, shape index: {}]   ;;  %s2507_s4 = inlined_call_operand.vmem [shape: f32[1,32], index: 4, kind: input, shape index: {}]   ;;  %s2508_s5 = inlined_call_operand.vmem [shape: f32[16,64], index: 5, kind: input, shape index: {}]   ;;  %s2509_s6 = inlined_call_operand.vmem [shape: f32[1,64], index: 6, kind: input, shape index: {}]   ;;  %s2510_s7 = inlined_call_operand.hbm [shape: f32[32,32], index: 7, kind: input, shape index: {}]   ;;  %s2511_s8 = inlined_call_operand.vmem [shape: f32[1,32], index: 8, kind: input, shape index: {}]   ;;  %s2512_s9 = inlined_call_operand.hbm [shape: f32[2,8,32], index: 9, kind: output, shape index: {}]  }
   0x1   :  { %2533 = sst [smem:[#allocation22_spill]] %s2504_s1 }
   0x2   :  { %2534 = sst [smem:[#allocation23_spill]] %s2506_s3 }
   0x3   :  { %14 = vsyncpa [#allocation4], 0 }
   0x4   :  { %16 = vsyncpa [#allocation4 + $0x1], 0 }
   0x5   :  { %17 = vsyncpa [#allocation7], 0 }
   0x6   :  { %19 = vsyncpa [#allocation7 + $0x1], 0 }
   0x7   :  { %20 = vsyncpa [#allocation10], 0 }
   0x8   :  { %21 = vsyncpa [#allocation5], 0 }
   0x9   :  { %23 = vsyncpa [#allocation5 + $0x1], 0  ;;  %s2090_s30 = smov 0   ;;  %s2092_s10 = smov 0  }
   0xa   :  { %s2094_s11 = smov 0   ;;  %s2096_s12 = smov 0  }
   0xb LB: > { %2535 = sst [smem:[#allocation17_spill]] %s2005_s30  ;;  %s2111_s13 = sadd.s32 4294967295, %s2017_s12   ;;  %s2017_s12 = sphi %s2096_s12, %s2571_s12   ;;  %s2013_s11 = sphi %s2094_s11, %s2573_s11   ;;  %s2009_s10 = sphi %s2092_s10, %s2575_s10   ;;  %s2005_s30 = sphi %s2090_s30, %s2574_s30  }
   0xc   : > { %2536 = sst [smem:[#allocation18_spill]] %s2013_s11  ;;  %s1536_s14 = sadd.s32 4294967294, %s2017_s12  }
   0xd   : > { %p49_p0 = scmp.ne.s32.totalorder %s2009_s10, %s2005_s30  ;;  %p2513_p1 = scmp.eq.s32.totalorder %s2111_s13, 0 }
   0xe   : > { %p257_p3 = scmp.eq.s32.totalorder %s1536_s14, 1  ;;  %p1537_p5 = scmp.ge.s32.totalorder %s2017_s12, 1 }
   0xf   : > { %p2120_p4 = por %p2513_p1, %p49_p0  ;;  %p264_p7 = scmp.lt.s32.totalorder %s2017_s12, 3 }
  0x10   : > { %p2125_p6 = por %p257_p3, %p49_p0  ;;  %s2019_s18 = smov [#allocation9]  }
  0x11   : > { %s2537_s15 = scalar_select %p2120_p4, 1, 0 }
  0x12   : > { %s2538_s16 = scalar_select %p2125_p6, 1, 0 }
  0x13   : > { %p2130_p8 = pnand %p1537_p5, %p264_p7  ;;  %s276_s19 = sshll.u32 %s2019_s18, 4  ;;  %s2134_s19 = int_to_ptr.vmem [resolvable:$true] %s276_s19 }
  0x14   : > { %2539 = sst [smem:[#allocation19_spill]] %s2538_s16  ;;  %s2146_s21 = sadd.s32 1, %s2017_s12  }
  0x15   : > { %s2540_s17 = scalar_select %p2130_p8, 1, 0 }
  0x16   : > { %p1705_p9 = pneg %p2130_p8  ;;  %2542 = sst [smem:[#allocation20_spill]] %s2146_s21 }
  0x17   : > { %s36_s22 = sadd.s32 1, %s2013_s11  ;;  %s33_s23 = ssub.s32 %s2017_s12, %s2146_s21 }
  0x18   : > { %p2141_p11 = pnand %p1705_p9, %p2513_p1  ;;  %s2543_s3 = sld [smem:[#allocation23_spill]] }
  0x1a   : > { %s2541_s20 = scalar_select %p2141_p11, 1, 0 }
  0x1b   : > { %p2521_p13 = pneg %p2141_p11 }
  0x1e   : > { %s1797_s26 = scalar_lea.hbm %s2543_s3, 512 }
  0x1f   : > { %p1798_p12 = scmp.ne.s32.totalorder %s2543_s3, %s1797_s26  ;;  %p1804_p5 = scmp.lt.u32.totalorder %s1797_s26, %s2543_s3 }
  0x21   : > { %p1800_p0 = pnand %p2521_p13, %p1798_p12 }
  0x23   : > { %p1801_p3 = pneg %p1800_p0 }
  0x25   : > { %p1806_p7 = pnand %p1804_p5, %p1801_p3 }
  0x27   : > { %1809 = shalt.err (!%p1806_p7)
}
  0x28   : > { %s1810_s18 = scalar_lea.vmem %s2134_s19, 512  ;;  %p1818_p2 = scmp.lt.s32.totalorder %s2134_s19, %s2134_s19 }
  0x29   : > { %p1811_p9 = scmp.ne.s32.totalorder %s2134_s19, %s1810_s18  ;;  %p1819_p12 = scmp.lt.s32.totalorder %s1810_s18, %s1810_s18 }
  0x2b   : > { %p1813_p10 = pnand %p1811_p9, %p2521_p13  ;;  %p1820_p0 = por %p1819_p12, %p1818_p2 }
  0x2d   : > { %p1814_p1 = pneg %p1813_p10 }
  0x2f   : > { %p1821_p6 = pnand %p1820_p0, %p1814_p1 }
  0x31   : > { %1824 = shalt.err (!%p1821_p6)
}
  0x32   : > { %s2516_s24 = smov 128   ;;  %s2517_s25 = smov 8  }
  0x33   : > { %1708 = dma.hbm_to_vmem [thread:$0]  (!%p2141_p11), %s2543_s3, 512, %s2134_s19, [#allocation10], %s2516_s24, %s2516_s24, %s2517_s25  }
  0x34   : > { %p34_p1 = scmp.eq.s32.totalorder %s33_s23, 0  ;;  %p43_p2 = scmp.ne.s32.totalorder %s2013_s11, %s2009_s10 }
  0x35   : > { %p44_p6 = scmp.eq.s32.totalorder %s2017_s12, 0  ;;  %p1728_p10 = scmp.lt.s32.totalorder %s2017_s12, 2 }
  0x36   : > { %s2186_s28 = scalar_select %p34_p1, %s2013_s11, %s36_s22  }
  0x37   : > { %p45_p3 = por %p44_p6, %p43_p2  ;;  %p2545_p5 = scmp.eq.s32.totalorder %s2111_s13, 1 }
  0x38   : > { %2544 = sst [smem:[#allocation21_spill]] %s2186_s28  ;;  %s2195_s14 = sand.u32 1, %s2013_s11  }
  0x39   : > { %p2190_p7 = por %p2545_p5, %p43_p2  ;;  %s2520_s18 = sshll.u32 %s2017_s12, 7 }
  0x3a   : > { %s2519_s21 = sshll.u32 %s2195_s14, 3  ;;  %p2199_p9 = pnand %p1728_p10, %p45_p3 }
  0x3b   : > { %s2546_s29 = scalar_select %p2190_p7, 1, 0 }
  0x3c   : > { %s2547_s19 = scalar_select %p2199_p9, 1, 0 }
  0x3d   : > { %s333_s23 = sand.u32 1, %s2017_s12   ;;  %s2548_s1 = sld [smem:[#allocation22_spill]] }
  0x3e   : > { %s337_s24 = scalar_lea.vmem [#allocation6], %s2519_s21  ;;  %s2215_s3 = scalar_lea.sflag [#allocation7], %s333_s23 }
  0x3f   : > { %s344_s25 = sshll.u32 %s337_s24, 4  ;;  %p2221_p0 = pneg %p2199_p9  ;;  %s2213_s25 = int_to_ptr.vmem [resolvable:$true] %s344_s25 }
  0x41   : > { %s2549_s11 = scalar_select %p2221_p0, 1, 0 }
  0x43   : > { %s2209_s27 = scalar_lea.hbm %s2548_s1, %s2520_s18  ;;  %s1830_s21 = scalar_lea.hbm %s2548_s1, 256 }
  0x44   : > { %s1825_s28 = scalar_lea.hbm %s2209_s27, 128  ;;  %p1831_p6 = scmp.lt.u32.totalorder %s2209_s27, %s2548_s1 }
  0x45   : > { %p1826_p12 = scmp.ne.s32.totalorder %s2209_s27, %s1825_s28  ;;  %p1832_p10 = scmp.lt.u32.totalorder %s1830_s21, %s1825_s28 }
  0x46   : > { %p1834_p5 = scmp.lt.u32.totalorder %s1825_s28, %s2209_s27 }
  0x47   : > { %p1828_p1 = pnand %p2221_p0, %p1826_p12  ;;  %p1833_p3 = por %p1832_p10, %p1831_p6 }
  0x49   : > { %p1829_p2 = pneg %p1828_p1  ;;  %p1835_p13 = por %p1834_p5, %p1833_p3 }
  0x4b   : > { %p1836_p7 = pnand %p1835_p13, %p1829_p2 }
  0x4d   : > { %1839 = shalt.err (!%p1836_p7)
}
  0x4e   : > { %s1840_s23 = scalar_lea.vmem %s2213_s25, 128  ;;  %s2022_s22 = smov [#allocation6]  }
  0x4f   : > { %p1841_p12 = scmp.ne.s32.totalorder %s2213_s25, %s1840_s23  ;;  %s1845_s26 = sshll.u32 %s2022_s22, 4  ;;  %s1846_s26 = int_to_ptr.vmem [resolvable:$false] %s1845_s26 }
  0x50   : > { %s1847_s18 = scalar_lea.vmem %s1846_s26, 256  ;;  %p1848_p8 = scmp.lt.s32.totalorder %s2213_s25, %s1846_s26 }
  0x51   : > { %p1843_p1 = pnand %p1841_p12, %p2221_p0  ;;  %p1849_p11 = scmp.lt.s32.totalorder %s1847_s18, %s1840_s23 }
  0x53   : > { %p1844_p4 = pneg %p1843_p1  ;;  %p1850_p6 = por %p1849_p11, %p1848_p8 }
  0x55   : > { %p1851_p10 = pnand %p1850_p6, %p1844_p4 }
  0x57   : > { %1854 = shalt.err (!%p1851_p10)
}
  0x58   : > { %1718 = dma.hbm_to_vmem [thread:$0]  (!%p2199_p9), %s2209_s27, 128, %s2213_s25, %s2215_s3  }
  0x59   : > { %s2023_s21 = smov [#allocation11]   ;;  %s1855_s22 = scalar_lea.hbm %s2510_s7, 512 }
  0x5a   : > { %s298_s28 = sshll.u32 %s2023_s21, 4  ;;  %p1856_p8 = scmp.ne.s32.totalorder %s2510_s7, %s1855_s22  ;;  %s299_s28 = int_to_ptr.vmem [resolvable:$true] %s298_s28 }
  0x5b   : > { %p2550_p4 = scmp.ne.s32.totalorder %s2541_s20, 0  ;;  %p1862_p2 = scmp.lt.u32.totalorder %s1855_s22, %s2510_s7 }
  0x5d   : > { %p2551_p11 = pneg %p2550_p4 }
  0x5f   : > { %p1858_p13 = pnand %p1856_p8, %p2551_p11 }
  0x61   : > { %p1859_p7 = pneg %p1858_p13 }
  0x63   : > { %p1864_p3 = pnand %p1862_p2, %p1859_p7 }
  0x65   : > { %1867 = shalt.err (!%p1864_p3)
}
  0x66   : > { %s1868_s25 = scalar_lea.vmem %s299_s28, 512  ;;  %p2552_p12 = pmov %p2551_p11 }
  0x67   : > { %p1869_p5 = scmp.ne.s32.totalorder %s299_s28, %s1868_s25  ;;  %p1876_p10 = scmp.lt.s32.totalorder %s299_s28, %s299_s28 }
  0x68   : > { %p1877_p9 = scmp.lt.s32.totalorder %s1868_s25, %s1868_s25 }
  0x69   : > { %p1871_p1 = pnand %p1869_p5, %p2552_p12 }
  0x6a   : > { %p1878_p0 = por %p1877_p9, %p1876_p10 }
  0x6b   : > { %p1872_p6 = pneg %p1871_p1 }
  0x6d   : > { %p1879_p8 = pnand %p1878_p0, %p1872_p6 }
  0x6f   : > { %1882 = shalt.err (!%p1879_p8)
}
  0x70   : > { %s2553_s1 = smov 8   ;;  %s2554_s16 = smov 128  }
  0x71   : > { %1711 = dma.hbm_to_vmem [thread:$0]  (!%p2550_p4), %s2510_s7, 512, %s299_s28, [#allocation10], %s2554_s16, %s2554_s16, %s2553_s1  }
  0x72   : > { %s2555_s24 = sshll.u32 %s2017_s12, 7  ;;  %s2556_s18 = sshll.u32 %s2195_s14, 3 }
  0x73   : > { %s2273_s23 = scalar_lea.hbm %s2503_s0, %s2555_s24  ;;  %s319_s20 = scalar_lea.vmem [#allocation3], %s2556_s18 }
  0x74   : > { %s326_s25 = sshll.u32 %s319_s20, 4  ;;  %s1545_s27 = sshll.u32 %s2195_s14, 2  ;;  %s2277_s25 = int_to_ptr.vmem [resolvable:$true] %s326_s25 }
  0x75   : > { %s316_s21 = scalar_lea.sflag [#allocation4], %s2195_s14  ;;  %s1883_s30 = scalar_lea.hbm %s2273_s23, 128 }
  0x76   : > { %p1884_p9 = scmp.ne.s32.totalorder %s2273_s23, %s1883_s30  ;;  %p2557_p0 = scmp.ne.s32.totalorder %s2549_s11, 0 }
  0x77   : > { %s1888_s16 = scalar_lea.hbm %s2503_s0, 256  ;;  %p1889_p13 = scmp.lt.u32.totalorder %s2273_s23, %s2503_s0 }
  0x78   : > { %p1886_p4 = pnand %p1884_p9, %p2557_p0  ;;  %p1890_p7 = scmp.lt.u32.totalorder %s1888_s16, %s1883_s30 }
  0x79   : > { %p1892_p3 = scmp.lt.u32.totalorder %s1883_s30, %s2273_s23 }
  0x7a   : > { %p1887_p11 = pneg %p1886_p4  ;;  %p1891_p2 = por %p1890_p7, %p1889_p13 }
  0x7c   : > { %p1893_p5 = por %p1892_p3, %p1891_p2 }
  0x7e   : > { %p1894_p12 = pnand %p1893_p5, %p1887_p11 }
  0x80   : > { %1897 = shalt.err (!%p1894_p12)
}
  0x81   : > { %s1898_s26 = scalar_lea.vmem %s2277_s25, 128  ;;  %s2024_s18 = smov [#allocation3]  }
  0x82   : > { %p1899_p1 = scmp.ne.s32.totalorder %s2277_s25, %s1898_s26  ;;  %s1903_s20 = sshll.u32 %s2024_s18, 4  ;;  %s1904_s20 = int_to_ptr.vmem [resolvable:$false] %s1903_s20 }
  0x83   : > { %s1905_s28 = scalar_lea.vmem %s1904_s20, 256  ;;  %p1906_p8 = scmp.lt.s32.totalorder %s2277_s25, %s1904_s20 }
  0x84   : > { %p1901_p6 = pnand %p1899_p1, %p2557_p0  ;;  %p1907_p9 = scmp.lt.s32.totalorder %s1905_s28, %s1898_s26 }
  0x86   : > { %p1902_p10 = pneg %p1901_p6  ;;  %p1908_p4 = por %p1907_p9, %p1906_p8 }
  0x88   : > { %p1909_p13 = pnand %p1908_p4, %p1902_p10 }
  0x8a   : > { %1912 = shalt.err (!%p1909_p13)
}
  0x8b   : > { %p2558_p11 = scmp.ne.s32.totalorder %s2547_s19, 0  ;;  %s1546_s30 = sshll.u32 %s2017_s12, 6 }
  0x8c   : > { %s2306_s24 = scalar_lea.hbm %s2505_s2, %s1546_s30  ;;  %s355_s22 = scalar_lea.vmem [#allocation8], %s1545_s27 }
  0x8d   : > { %1715 = dma.hbm_to_vmem [thread:$0]  (!%p2558_p11), %s2273_s23, 128, %s2277_s25, %s316_s21  }
  0x8e   : > { %s362_s26 = sshll.u32 %s355_s22, 4  ;;  %s1913_s18 = scalar_lea.hbm %s2306_s24, 64  ;;  %s363_s26 = int_to_ptr.vmem [resolvable:$true] %s362_s26 }
  0x8f   : > { %p1914_p7 = scmp.ne.s32.totalorder %s2306_s24, %s1913_s18  ;;  %s1918_s21 = scalar_lea.hbm %s2505_s2, 128 }
  0x90   : > { %p1919_p5 = scmp.lt.u32.totalorder %s2306_s24, %s2505_s2  ;;  %p1920_p12 = scmp.lt.u32.totalorder %s1918_s21, %s1913_s18 }
  0x91   : > { %p1916_p2 = pnand %p1914_p7, %p2557_p0  ;;  %p1922_p6 = scmp.lt.u32.totalorder %s1913_s18, %s2306_s24 }
  0x92   : > { %p1921_p1 = por %p1920_p12, %p1919_p5 }
  0x93   : > { %p1917_p3 = pneg %p1916_p2 }
  0x94   : > { %p1923_p10 = por %p1922_p6, %p1921_p1 }
  0x96   : > { %p1924_p8 = pnand %p1923_p10, %p1917_p3 }
  0x98   : > { %1927 = shalt.err (!%p1924_p8)
}
  0x99   : > { %s1928_s14 = scalar_lea.vmem %s363_s26, 64  ;;  %s2025_s27 = smov [#allocation8]  }
  0x9a   : > { %p1929_p9 = scmp.ne.s32.totalorder %s363_s26, %s1928_s14  ;;  %s1933_s30 = sshll.u32 %s2025_s27, 4  ;;  %s1934_s30 = int_to_ptr.vmem [resolvable:$false] %s1933_s30 }
  0x9b   : > { %s1935_s1 = scalar_lea.vmem %s1934_s30, 128  ;;  %p1936_p7 = scmp.lt.s32.totalorder %s363_s26, %s1934_s30 }
  0x9c   : > { %p1931_p4 = pnand %p1929_p9, %p2557_p0  ;;  %p1937_p2 = scmp.lt.s32.totalorder %s1935_s1, %s1928_s14 }
  0x9e   : > { %p1932_p13 = pneg %p1931_p4  ;;  %p1938_p11 = por %p1937_p2, %p1936_p7 }
  0xa0   : > { %p1939_p5 = pnand %p1938_p11, %p1932_p13 }
  0xa2   : > { %1942 = shalt.err (!%p1939_p5)
}
  0xa3   : > { %p2559_p12 = scmp.ne.s32.totalorder %s2547_s19, 0  ;;  %p2560_p3 = scmp.ne.s32.totalorder %s2540_s17, 0 }
  0xa4   : > { %s2331_s11 = sand.u32 (!%p2560_p3), 1, %s2009_s10   ;;  %p2561_p0 = scmp.ne.s32.totalorder (!%p2560_p3), %s2537_s15, 0 }
  0xa5   : > { %1721 = dma.hbm_to_vmem [thread:$0]  (!%p2559_p12), %s2306_s24, 64, %s363_s26, %s2215_s3  }
  0xa6   : > { %371 = sbr.rel (%p2560_p3) target bundleno = 1619 (0x653), region = 56  ;;  %s2334_s16 = sshll.u32 (!%p2560_p3), %s2331_s11, 3 }
  0xa7   : > { %s374_s22 = scalar_lea.sflag (!%p2560_p3), [#allocation4], %s2331_s11  ;;  %s377_s18 = scalar_lea.vmem (!%p2560_p3), [#allocation3], %s2334_s16 }
  0xad   : > { %1988 = dma.done.wait (%p2561_p0), %s374_s22, 128  }
  0xae   : > { %1990 = vsyncadd (%p2561_p0), %s374_s22, 4294967168  ;;  %s382_s3 = sand.u32 1, %s2111_s13   ;;  %s386_s19 = scalar_lea.vmem [#allocation6], %s2334_s16 }
  0xaf   : > { %s383_s17 = scalar_lea.sflag [#allocation7], %s382_s3 }
  0xb0   : > { %1992 = dma.done.wait (%p2561_p0), %s383_s17, 192  }
  0xb1   : > { %1994 = vsyncadd (%p2561_p0), %s383_s17, 4294967104  ;;  %s1550_s24 = sshll.u32 %s2331_s11, 2  ;;  %p2562_p11 = scmp.eq.s32.totalorder %s2111_s13, 0 }
  0xb2   : > { %s2349_s26 = scalar_lea.vmem [#allocation8], %s1550_s24 }
  0xb3   : > { %1996 = dma.done.wait (%p2562_p11), [#allocation10], 1024   ;;  %p2563_p1 = pmov %p2562_p11 }
  0xb4   : > { %v2026_v0 = vmov 0.0|0.0   ;;  %vm2027_vm0 = vmmov 0   ;;  %v2028_v1 = vmov 0.0   ;;  %v450_v2 = vld [vmem:[#allocation9] sm:$0xff]  ;;  %v451_v3 = vld [vmem:[#allocation9 + $0x8] sm:$0xff]  ;;  %v536_v4 = vld [vmem:[%s2508_s5] sm:$0xff] }
  0xb5   : > { %1998 = vsyncadd (%p2563_p1), [#allocation10], 4294966272  ;;  %1674 = vmatprep.subr.bf16.mxu0 %v2026_v0  ;;  %1680 = vmatprep.subr.bf16.mxu1 %v2026_v0  ;;  %v1675_v5 = vpack.c.bf16 %v451_v3, %v450_v2  ;;  %v537_v6 = vld [vmem:[%s2508_s5 + $0x8] sm:$0xff]  ;;  %v452_v7 = vld [vmem:[#allocation9 + $0x10] sm:$0xff]  ;;  %vm545_vm1 = vcmask 130048   ;;  %vm461_vm2 = vcmask 261120  }
  0xb6   : > { %1620 = vmatprep.mubr.msk.f32.mxu1 %vm2027_vm0, %v2028_v1  ;;  %1613 = vmatprep.mubr.msk.f32.mxu0 %vm2027_vm0, %v2028_v1  ;;  %v453_v8 = vld [vmem:[#allocation9 + $0x18] sm:$0xff]  ;;  %v1681_v9 = vpack.c.bf16 %v537_v6, %v536_v4  ;;  %v449_v11 = vld [vmem:[%s386_s19] sm:$0xff]  ;;  %vm622_vm3 = vcmask 64512   ;;  %s2029_s30 = smov 112   ;;  %s2030_s1 = smov 120   ;;  %vm958_vm5 = vcmask 130112  }
  0xb7   : > { %1676 = vmatpush3.bf16.msra.mxu0 %v1675_v5  ;;  %v1678_v10 = vpack.c.bf16 %v453_v8, %v452_v7  ;;  %v448_v12 = vld [vmem:[%s377_s18] sm:$0xff]  ;;  %v1556_v13 = vld [vmem:[%s2509_s6] ss:$0 sm:$0xff]  ;;  %s2031_s22 = smov 104   ;;  %s2032_s18 = smov 96   ;;  %vm1130_vm6 = vcmask 195712  }
  0xb8   : > { %1682 = vmatpush3.bf16.msra.mxu1 %v1681_v9  ;;  %1677 = vmatprep.subr.bf16.mxu0 %v2026_v0  ;;  %v1554_v17 = vld [vmem:[%s2507_s4] ss:$0 sm:$0xff]  ;;  %v619_v28 = vld [vmem:[%s2349_s26] sm:$0xf]  ;;  %s2033_s3 = smov 80   ;;  %s2034_s17 = smov 72  }
  0xb9   : > { %1623 = vmatprep.subr.mxu1 %v2028_v1  ;;  %v620_v29 = vunpack.c.l.bf16 %v619_v28  ;;  %s2035_s19 = smov 88   ;;  %s2036_s24 = smov 8   ;;  %vm1302_vm7 = vcmask 261312  }
  0xba   : > { %s2037_s26 = smov 16   ;;  %s2038_s15 = smov 24  }
  0xbb   : > { %1679 = vmatpush3.bf16.msra.mxu0 %v1678_v10  ;;  %1621 = vmatmul.mubr.msk.f32.vlgmr.msra.gmra.mrb[0].mxu1 %vm545_vm1, %v449_v11  ;;  %vm2410_vm4 = vcmp.gt.f32.partialorder %v620_v29, 0.0  ;;  %s1573_s21 = sshll.u32 %s2111_s13, 7  ;;  %s447_s20 = scalar_lea.vmem [#allocation12], %s2334_s16 }
  0xbc   : > { %1625 = vmatprep.mubr.msk.f32.mxu1 %vm2027_vm0, %v2028_v1  ;;  %1628 = vmatprep.subr.mxu0 %v2028_v1  ;;  %s1404_s28 = sshll.u32 %s447_s20, 4  ;;  %p2566_p10 = scmp.ne.s32.totalorder %s2546_s29, 0  ;;  %s2460_s28 = int_to_ptr.vmem [resolvable:$true] %s1404_s28 }
  0xbd   : > { %s2039_s13 = smov [#allocation12]  }
  0xbe   : > { %1614 = vmatmul.mubr.msk.f32.vlgmr.msra.gmra.mrb[0].mxu0 %vm461_vm2, %v448_v12  ;;  %s1947_s16 = sshll.u32 %s2039_s13, 4  ;;  %s1948_s16 = int_to_ptr.vmem [resolvable:$false] %s1947_s16 }
  0xbf   : > { %1630 = vmatprep.mubr.msk.f32.mxu0 %vm2027_vm0, %v2028_v1  ;;  %p1950_p4 = scmp.lt.s32.totalorder %s2460_s28, %s1948_s16 }
 0x18e   : > { %v615_v14 = vpop.f32.mrb[0].mxu1 }
 0x18f   : > { %v2380_v15 = vadd.f32 %v1556_v13, %v615_v14  ;;  %v1622_v16 = vpop.f32.mrb[1].mxu1 }
 0x191   : > { %v531_v18 = vpop.f32.mrb[0].mxu0  ;;  %962 = vrot.lane.b32.xlu1 %v2380_v15, %s2029_s30  ;;  %790 = vrot.lane.b32.xlu0 %v2380_v15, %s2030_s1 }
 0x192   : > { %v532_v19 = vadd.f32 %v1554_v17, %v531_v18  ;;  %v1615_v20 = vpop.f32.mrb[1].mxu0  ;;  %1624 = vmatpush3.xpose.msk.msra.mxu1 %vm622_vm3, %v2380_v15 }
 0x193   : > { %1633 = vmatprep.subr.mxu1 %v2028_v1 }
 0x194   : > { %v535_v21 = vmul.f32 0.35355338, %v532_v19 }
 0x196   : > { %960 = vrot.lane.b32.xlu1 %v535_v21, %s2029_s30  ;;  %788 = vrot.lane.b32.xlu0 %v535_v21, %s2030_s1  ;;  %s2458_s30 = scalar_lea.hbm %s2512_s9, %s1573_s21  ;;  %s1391_s1 = scalar_lea.sflag [#allocation5], %s2331_s11 }
 0x197   : > { %1626 = vmatmul.mubr.msk.f32.vlgmr.msra.gmra.mrb[2].mxu1 %vm622_vm3, %v535_v21 }
 0x198   : > { %1635 = vmatprep.mubr.msk.f32.mxu1 %vm2027_vm0, %v2028_v1 }
 0x19a   : > { %1132 = vrot.lane.b32.xlu1 %v535_v21, %s2031_s22  ;;  %1134 = vrot.lane.b32.xlu0 %v2380_v15, %s2031_s22  ;;  %s1943_s22 = scalar_lea.vmem %s2460_s28, 128 }
 0x19b   : > { %p1944_p6 = scmp.ne.s32.totalorder %s2460_s28, %s1943_s22 }
 0x19d   : > { %p1945_p8 = pnand %p1944_p6, %p2566_p10 }
 0x19f   : > { %p1946_p9 = pneg %p1945_p8 }
 0x203   : > { %v791_v22 = vpop.permute.xlu0 %790  ;;  %v963_v23 = vpop.permute.xlu1 %962 }
 0x204   : > { %1634 = vmatpush3.xpose.msk.msra.mxu1 %vm622_vm3, %v791_v22 }
 0x205   : > { %1643 = vmatprep.subr.mxu1 %v2028_v1 }
 0x208   : > { %v789_v24 = vpop.permute.xlu0 %788  ;;  %v961_v25 = vpop.permute.xlu1 %960 }
 0x209   : > { %1636 = vmatmul.mubr.msk.f32.vlgmr.msra.gmra.mrb[4].mxu1 %vm622_vm3, %v789_v24  ;;  %v1306_v24 = vld [vmem:[#allocation11 + $0x8] sm:$0xff] }
 0x20a   : > { %1644 = vmatpush3.xpose.msk.msra.mxu1 %vm622_vm3, %v963_v23  ;;  %1645 = vmatprep.mubr.msk.f32.mxu1 %vm2027_vm0, %v2028_v1  ;;  %v1305_v23 = vld [vmem:[#allocation11] sm:$0xff] }
 0x20b   : > { %1653 = vmatprep.subr.mxu1 %v2028_v1 }
 0x20c   : > { %v1135_v26 = vpop.permute.xlu0 %1134  ;;  %v1133_v27 = vpop.permute.xlu1 %1132 }
 0x20d   : > { %1646 = vmatmul.mubr.msk.f32.vlgmr.msra.gmra.mrb[6].mxu1 %vm622_vm3, %v961_v25  ;;  %v1684_v25 = vpack.c.bf16 %v1306_v24, %v1305_v23 }
 0x20e   : > { %1654 = vmatpush3.xpose.msk.msra.mxu1 %vm622_vm3, %v1135_v26  ;;  %1655 = vmatprep.mubr.msk.f32.mxu1 %vm2027_vm0, %v2028_v1  ;;  %v1307_v26 = vld [vmem:[#allocation11 + $0x10] sm:$0xff] }
 0x20f   : > { %1683 = vmatprep.subr.bf16.mxu1 %v2026_v0 }
 0x211   : > { %1656 = vmatmul.mubr.msk.f32.vlgmr.msra.gmra.mrb[8].mxu1 %vm622_vm3, %v1133_v27  ;;  %v1308_v27 = vld [vmem:[#allocation11 + $0x18] sm:$0xff] }
 0x212   : > { %1671 = vmatprep.mubr.msk.f32.mxu1 %vm2027_vm0, %v2028_v1  ;;  %1685 = vmatpush3.bf16.msra.mxu1 %v1684_v25  ;;  %v1687_v28 = vpack.c.bf16 %v1308_v27, %v1307_v26 }
 0x213   : > { %1686 = vmatprep.subr.bf16.mxu1 %v2026_v0 }
 0x216   : > { %1688 = vmatpush3.bf16.msra.mxu1 %v1687_v28 }
 0x26a   : > { %v695_v31 = vpop.f32.mrb[2].mxu1 }
 0x26b   : > { %v699_v32 = vsel %vm2410_vm4, %v695_v31, -3.4028235e+38  ;;  %v1627_v33 = vpop.f32.mrb[3].mxu1 }
 0x26c   : > { %v700_v34 = vsel %vm622_vm3, %v699_v32, -inf }
 0x26d   : > { %701 = vmax.xlane.f32.xlu0 %v700_v34 }
 0x2dc   : > { %v862_v35 = vpop.f32.mrb[4].mxu1 }
 0x2dd   : > { %v866_v36 = vsel %vm2410_vm4, %v862_v35, -3.4028235e+38  ;;  %v1637_v37 = vpop.f32.mrb[5].mxu1 }
 0x2de   : > { %v867_v38 = vsel %vm622_vm3, %v866_v36, -inf  ;;  %v1570_v37 = vld [vmem:[%s2511_s8] ss:$0 sm:$0xff] }
 0x2df   : > { %868 = vmax.xlane.f32.xlu1 %v867_v38 }
 0x2e0   : > { %v1034_v39 = vpop.f32.mrb[6].mxu1 }
 0x2e1   : > { %v1038_v40 = vsel %vm2410_vm4, %v1034_v39, -3.4028235e+38  ;;  %v1647_v41 = vpop.f32.mrb[7].mxu1 }
 0x2e2   : > { %v1039_v42 = vsel %vm622_vm3, %v1038_v40, -inf }
 0x2e3   : > { %1040 = vmax.xlane.f32.xlu0 %v1039_v42 }
 0x2e4   : > { %v1206_v43 = vpop.f32.mrb[8].mxu1 }
 0x2e5   : > { %v1210_v44 = vsel %vm2410_vm4, %v1206_v43, -3.4028235e+38  ;;  %v1657_v45 = vpop.f32.mrb[9].mxu1 }
 0x2e6   : > { %v1211_v46 = vsel %vm622_vm3, %v1210_v44, -inf }
 0x2e7   : > { %1212 = vmax.xlane.f32.xlu0 %v1211_v46 }
 0x2f0   : > { %711 = vrot.lane.b32.xlu1 %v2380_v15, %s2032_s18  ;;  %s1949_s18 = scalar_lea.vmem %s1948_s16, 256 }
 0x2f1   : > { %p1951_p13 = scmp.lt.s32.totalorder %s1949_s18, %s1943_s22 }
 0x2f3   : > { %p1952_p7 = por %p1951_p13, %p1950_p4 }
 0x2f5   : > { %p1953_p2 = pnand %p1952_p7, %p1946_p9 }
 0x2fa   : > { %v702_v47 = vpop.xlane.xlu0 %701 }
 0x2fb   : > { %v703_v48 = vsub.f32 %v699_v32, %v702_v47 }
 0x2fd   : > { %v704_v49 = vmul.f32 1.442695, %v703_v48 }
 0x2ff   : > { %1781 = vpow2.f32 %v704_v49 }
 0x309   : > { %v1782_v50 = vpop.eup %1781 }
 0x30a   : > { %v706_v51 = vsel %vm622_vm3, %v1782_v50, 0.0 }
 0x314   : > { %707 = vadd.xlane.f32.xlu1 %v706_v51 }
 0x36c   : > { %v869_v52 = vpop.xlane.xlu1 %868 }
 0x36d   : > { %v870_v53 = vsub.f32 %v866_v36, %v869_v52 }
 0x36f   : > { %v871_v54 = vmul.f32 1.442695, %v870_v53 }
 0x370   : > { %v712_v55 = vpop.permute.xlu1 %711  ;;  %v1041_v56 = vpop.xlane.xlu0 %1040 }
 0x371   : > { %1783 = vpow2.f32 %v871_v54  ;;  %v1042_v57 = vsub.f32 %v1038_v40, %v1041_v56  ;;  %1629 = vmatpush3.msra.mxu0 %v712_v55 }
 0x372   : > { %1638 = vmatprep.subr.mxu0 %v2028_v1 }
 0x373   : > { %v1043_v58 = vmul.f32 1.442695, %v1042_v57 }
 0x374   : > { %v1213_v59 = vpop.xlane.xlu0 %1212 }
 0x375   : > { %1785 = vpow2.f32 %v1043_v58  ;;  %v1214_v60 = vsub.f32 %v1210_v44, %v1213_v59 }
 0x377   : > { %v1215_v61 = vmul.f32 1.442695, %v1214_v60 }
 0x379   : > { %1787 = vpow2.f32 %v1215_v61 }
 0x37b   : > { %v1784_v62 = vpop.eup %1783 }
 0x37c   : > { %v873_v63 = vsel %vm622_vm3, %v1784_v62, 0.0 }
 0x37d   : > { %874 = vadd.xlane.f32.xlu0 %v873_v63 }
 0x37f   : > { %v1786_v2 = vpop.eup %1785 }
 0x380   : > { %v1045_v3 = vsel %vm622_vm3, %v1786_v2, 0.0 }
 0x381   : > { %1046 = vadd.xlane.f32.xlu1 %v1045_v3 }
 0x383   : > { %v1788_v4 = vpop.eup %1787 }
 0x384   : > { %v1217_v5 = vsel %vm622_vm3, %v1788_v4, 0.0 }
 0x385   : > { %1218 = vadd.xlane.f32.xlu0 %v1217_v5 }
 0x392   : > { %1050 = vrot.lane.b32.xlu1 %v2380_v15, %s2033_s3 }
 0x396   : > { %1222 = vrot.lane.b32.xlu1 %v2380_v15, %s2034_s17 }
 0x39b   : > { %878 = vrot.lane.b32.xlu0 %v2380_v15, %s2035_s19 }
 0x3a1   : > { %v708_v6 = vpop.xlane.xlu1 %707 }
 0x3a2   : > { %1789 = vrcp.f32 %v708_v6 }
 0x3ac   : > { %v1790_v7 = vpop.eup %1789 }
 0x3ad   : > { %v710_v8 = vmul.f32 %v1790_v7, %v1782_v50 }
 0x3af   : > { %1631 = vmatmul.mubr.msk.f32.vlgmr.msra.gmra.mrb[2].mxu0 %vm622_vm3, %v710_v8 }
 0x3b0   : > { %1640 = vmatprep.mubr.msk.f32.mxu0 %vm2027_vm0, %v2028_v1 }
 0x40a   : > { %v875_v9 = vpop.xlane.xlu0 %874 }
 0x40b   : > { %1791 = vrcp.f32 %v875_v9 }
 0x40e   : > { %v1047_v10 = vpop.xlane.xlu1 %1046 }
 0x40f   : > { %1793 = vrcp.f32 %v1047_v10 }
 0x412   : > { %v1219_v11 = vpop.xlane.xlu0 %1218  ;;  %v1051_v14 = vpop.permute.xlu1 %1050 }
 0x413   : > { %1795 = vrcp.f32 %v1219_v11 }
 0x415   : > { %v1792_v12 = vpop.eup %1791 }
 0x416   : > { %v877_v13 = vmul.f32 %v1792_v12, %v1784_v62  ;;  %v879_v16 = vpop.permute.xlu0 %878  ;;  %v1223_v18 = vpop.permute.xlu1 %1222 }
 0x417   : > { %1639 = vmatpush3.msra.mxu0 %v879_v16 }
 0x418   : > { %1641 = vmatmul.mubr.msk.f32.vlgmr.msra.gmra.mrb[4].mxu0 %vm622_vm3, %v877_v13  ;;  %1648 = vmatprep.subr.mxu0 %v2028_v1 }
 0x419   : > { %v1794_v15 = vpop.eup %1793  ;;  %1649 = vmatpush3.msra.mxu0 %v1051_v14  ;;  %1650 = vmatprep.mubr.msk.f32.mxu0 %vm2027_vm0, %v2028_v1 }
 0x41a   : > { %v1049_v17 = vmul.f32 %v1794_v15, %v1786_v2  ;;  %1658 = vmatprep.subr.mxu0 %v2028_v1 }
 0x41c   : > { %1651 = vmatmul.mubr.msk.f32.vlgmr.msra.gmra.mrb[6].mxu0 %vm622_vm3, %v1049_v17 }
 0x41d   : > { %v1796_v19 = vpop.eup %1795  ;;  %1659 = vmatpush3.msra.mxu0 %v1223_v18  ;;  %1660 = vmatprep.mubr.msk.f32.mxu0 %vm2027_vm0, %v2028_v1 }
 0x41e   : > { %v1221_v20 = vmul.f32 %v1796_v19, %v1788_v4 }
 0x420   : > { %1661 = vmatmul.mubr.msk.f32.vlgmr.msra.gmra.mrb[8].mxu0 %vm622_vm3, %v1221_v20 }
 0x482   : > { %v783_v21 = vpop.f32.mrb[2].mxu0 }
 0x483   : > { %787 = vst.msk [vmem:[#allocation2] sm:$0xff] %vm622_vm3, %v783_v21  ;;  %v1632_v22 = vpop.f32.mrb[3].mxu0 }
 0x4eb   : > { %v950_v29 = vpop.f32.mrb[4].mxu0 }
 0x4ec   : > { %955 = vrot.lane.b32.xlu0 %v950_v29, %s2036_s24  ;;  %v1642_v1 = vpop.f32.mrb[5].mxu0 }
 0x4ef   : > { %v1122_v30 = vpop.f32.mrb[6].mxu0 }
 0x4f0   : > { %1127 = vrot.lane.b32.xlu1 %v1122_v30, %s2037_s26  ;;  %v1652_v31 = vpop.f32.mrb[7].mxu0 }
 0x4f3   : > { %v1294_v32 = vpop.f32.mrb[8].mxu0 }
 0x4f4   : > { %1299 = vrot.lane.b32.xlu0 %v1294_v32, %s2038_s15  ;;  %v1662_v33 = vpop.f32.mrb[9].mxu0 }
 0x55e   : > { %v956_v34 = vpop.permute.xlu0 %955 }
 0x55f   : > { %959 = vst.msk [vmem:[#allocation2] sm:$0xff] %vm958_vm5, %v956_v34 }
 0x562   : > { %v1128_v0 = vpop.permute.xlu1 %1127 }
 0x563   : > { %1131 = vst.msk [vmem:[#allocation2] sm:$0xff] %vm1130_vm6, %v1128_v0 }
 0x566   : > { %v1300_v35 = vpop.permute.xlu0 %1299 }
 0x567   : > { %1303 = vst.msk [vmem:[#allocation2] sm:$0xff] %vm1302_vm7, %v1300_v35 }
 0x56e   : > { %v1304_v36 = vld [vmem:[#allocation2] sm:$0xff] }
 0x56f   : > { %1672 = vmatmul.mubr.msk.f32.vlgmr.msra.gmra.mrb[10].mxu1 %vm461_vm2, %v1304_v36 }
 0x642   : > { %v1385_v38 = vpop.f32.mrb[10].mxu1 }
 0x643   : > { %v1386_v39 = vadd.f32 %v1570_v37, %v1385_v38  ;;  %v1673_v40 = vpop.f32.mrb[11].mxu1 }
 0x645   : > { %1389 = vst.msk [vmem:[%s447_s20] sm:$0xff] %vm461_vm2, %v1386_v39 }
 0x646   : > { %1956 = shalt.err (!%p1953_p2)
}
 0x647   : > { %s1957_s11 = scalar_lea.hbm %s2458_s30, 128  ;;  %s1961_s19 = scalar_lea.hbm %s2512_s9, 256 }
 0x648   : > { %p1958_p5 = scmp.ne.s32.totalorder %s2458_s30, %s1957_s11  ;;  %p1962_p0 = scmp.lt.u32.totalorder %s2458_s30, %s2512_s9 }
 0x649   : > { %p1963_p11 = scmp.lt.u32.totalorder %s1961_s19, %s1957_s11  ;;  %p1965_p6 = scmp.lt.u32.totalorder %s1957_s11, %s2458_s30 }
 0x64a   : > { %p1959_p12 = pnand %p1958_p5, %p2566_p10 }
 0x64b   : > { %p1964_p1 = por %p1963_p11, %p1962_p0 }
 0x64c   : > { %p1960_p3 = pneg %p1959_p12 }
 0x64d   : > { %p1966_p8 = por %p1965_p6, %p1964_p1 }
 0x64f   : > { %p1967_p9 = pnand %p1966_p8, %p1960_p3 }
 0x651   : > { %1970 = shalt.err (!%p1967_p9)
}
 0x652   : > { %1703 = dma.vmem_to_hbm [thread:$0]  (%p2566_p10), %s2460_s28, 128, %s2458_s30, %s1391_s1  }
 0x653 PF: > { %s2567_s15 = sld [smem:[#allocation17_spill]]  ;;  %s2568_s23 = sld [smem:[#allocation19_spill]] }
 0x654   : > { %p2570_p13 = scmp.ge.s32.totalorder %s2017_s12, 2 }
 0x659   : > { %s1416_s25 = sand.u32 1, %s2567_s15   ;;  %p2569_p4 = scmp.ne.s32.totalorder %s2568_s23, 0 }
 0x65a   : > { %s1417_s21 = scalar_lea.sflag [#allocation5], %s1416_s25 }
 0x65b   : > { %p1723_p7 = pnand %p2570_p13, %p2569_p4 }
 0x65d   : > { %2000 = dma.done.wait (!%p1723_p7), %s1417_s21, 128  }
 0x65e   : > { %2002 = vsyncadd (!%p1723_p7), %s1417_s21, 4294967168  ;;  %s2571_s12 = sld [smem:[#allocation20_spill]]  ;;  %s2572_s20 = sld [smem:[#allocation18_spill]] }
 0x65f   : > { %s2573_s11 = sld [smem:[#allocation21_spill]]  ;;  %s2574_s30 = smov %s2009_s10 }
 0x664   : > { %p26_p2 = scmp.ge.s32.totalorder %s2571_s12, 4   ;;  %s2575_s10 = smov %s2572_s20 }
 0x666   :  { %28 = sbr.rel (!%p26_p2) target bundleno = 11 (0xb), region = 133 }
 0x66d   :  { %1422 = vsyncpa [#allocation4], 1 }
 0x66e   :  { %1424 = vsyncpa [#allocation4 + $0x1], 1 }
 0x66f   :  { %1425 = vsyncpa [#allocation7], 1 }
 0x670   :  { %1427 = vsyncpa [#allocation7 + $0x1], 1 }
 0x671   :  { %1428 = vsyncpa [#allocation10], 1 }
 0x672   :  { %1429 = vsyncpa [#allocation5], 1 }
 0x673   :  { %1431 = vsyncpa [#allocation5 + $0x1], 1 }

</bundles_post_ra>
